<compile_context>
chip_gen: v7x
topology: tpu7x:2x2x1
jax: 0.10.0
libtpu: 0.0.40
codegen_flags: <defaults>
</compile_context>

<pallas_src>
import functools

import jax
import jax.numpy as jnp
from jax.experimental import pallas as pl
from jax.experimental.pallas import tpu as pltpu

BN_EPS = 1e-5


def _mlp_kernel(matmul_dtype, x_ref, w_ref, b_ref, fcw_ref, fcb_ref, o_ref, h_ref):
    # One grid step == one hidden layer.
    #   x_ref:   (B, C)      input samples (resident; constant block index)
    #   w_ref:   (1, C, C)   this layer's weight, PyTorch (out, in) layout (streamed)
    #   b_ref:   (1, 1, C)   this layer's bias (streamed)
    #   fcw_ref: (O, C)      final linear weight, PyTorch (out, in) layout (resident)
    #   fcb_ref: (1, O)      final linear bias (resident)
    #   o_ref:   (B, O)      output (written on the last grid step only)
    #   h_ref:   (B, C) f32  VMEM scratch holding the running activation H
    layer = pl.program_id(0)

    @pl.when(layer == 0)
    def _():
        h_ref[...] = x_ref[...].astype(jnp.float32)

    H = h_ref[...]

    # dropout(p=0) == identity.
    # Linear: Hl = H @ W^T + b  -- contraction on the last dim of both operands,
    # so the PyTorch (out, in) weight layout is used directly (no transpose copy).
    Hl = jax.lax.dot_general(
        H.astype(matmul_dtype),
        w_ref[0].astype(matmul_dtype),
        dimension_numbers=(((1,), (1,)), ((), ())),
        preferred_element_type=jnp.float32,
    ) + b_ref[0]

    # BatchNorm1d(affine=False), training-mode batch stats (biased variance).
    # Full batch resides in this block, so the statistics are exact.
    mean = jnp.mean(Hl, axis=0, keepdims=True)
    centered = Hl - mean                                  # computed once, reused
    var = jnp.mean(centered * centered, axis=0, keepdims=True)
    Hl = centered * jax.lax.rsqrt(var + BN_EPS)           # rsqrt -> EUP slot (free-ish)

    # ReLU + residual; elementwise math stays f32 (native VPU path on all chips).
    h_ref[...] = H + jnp.maximum(Hl, 0.0)

    @pl.when(layer == pl.num_programs(0) - 1)
    def _():
        out = jax.lax.dot_general(
            h_ref[...].astype(matmul_dtype),
            fcw_ref[...].astype(matmul_dtype),
            dimension_numbers=(((1,), (1,)), ((), ())),
            preferred_element_type=jnp.float32,
        ) + fcb_ref[...]
        o_ref[...] = out.astype(o_ref.dtype)


def mlp_forward(x, layer_w, layer_b, fc_w, fc_b, *, matmul_dtype=jnp.bfloat16):
    """x: (B, C); layer_w: (L, C, C) PyTorch (out, in) layout; layer_b: (L, C);
    fc_w: (O, C) PyTorch layout; fc_b: (O,). Returns (B, O)."""
    B, C = x.shape
    L = layer_w.shape[0]
    O = fc_w.shape[0]

    # Copy-free reshapes only (contiguous views); no per-call weight transposes.
    b3 = layer_b.reshape(L, 1, C)
    fcb2 = fc_b.reshape(1, O)

    kernel = functools.partial(_mlp_kernel, matmul_dtype)

    grid_spec = pltpu.PrefetchScalarGridSpec(
        num_scalar_prefetch=0,
        grid=(L,),
        in_specs=[
            pl.BlockSpec((B, C), lambda l: (0, 0)),        # X (resident)
            pl.BlockSpec((1, C, C), lambda l: (l, 0, 0)),  # layer weight (streamed, double-buffered)
            pl.BlockSpec((1, 1, C), lambda l: (l, 0, 0)),  # layer bias (streamed)
            pl.BlockSpec((O, C), lambda l: (0, 0)),        # fc weight (resident)
            pl.BlockSpec((1, O), lambda l: (0, 0)),        # fc bias (resident)
        ],
        out_specs=pl.BlockSpec((B, O), lambda l: (0, 0)),  # written on last step only
        scratch_shapes=[pltpu.VMEM((B, C), jnp.float32)],  # running activation H
    )

    return pl.pallas_call(
        kernel,
        out_shape=jax.ShapeDtypeStruct((B, O), x.dtype),
        grid_spec=grid_spec,
        compiler_params=pltpu.CompilerParams(
            dimension_semantics=("arbitrary",),            # serial dependency through H
            vmem_limit_bytes=32 * 1024 * 1024,
        ),
    )(x, layer_w, b3, fc_w, fcb2)


def _reference(x, layer_w, layer_b, fc_w, fc_b):
    H = x.astype(jnp.float32)
    for i in range(layer_w.shape[0]):
        Hl = H @ layer_w[i].T + layer_b[i]
        mean = jnp.mean(Hl, axis=0, keepdims=True)
        var = jnp.mean((Hl - mean) ** 2, axis=0, keepdims=True)
        Hl = (Hl - mean) / jnp.sqrt(var + BN_EPS)
        Hl = jnp.maximum(Hl, 0.0)
        H = H + Hl
    return H @ fc_w.T + fc_b


if __name__ == "__main__":
    batch = 8
    in_channels = 32
    out_channels = 16
    num_layers = 3

    key = jax.random.PRNGKey(0)
    kx, kw, kb, kfw, kfb = jax.random.split(key, 5)

    x = jax.random.normal(kx, (batch, in_channels), dtype=jnp.float32)
    # Deterministic parameter init (uniform in +/- 1/sqrt(fan_in), like PyTorch default).
    bound = 1.0 / (in_channels ** 0.5)
    layer_w = jax.random.uniform(kw, (num_layers, in_channels, in_channels),
                                 minval=-bound, maxval=bound, dtype=jnp.float32)
    layer_b = jax.random.uniform(kb, (num_layers, in_channels),
                                 minval=-bound, maxval=bound, dtype=jnp.float32)
    fc_w = jax.random.uniform(kfw, (out_channels, in_channels),
                              minval=-bound, maxval=bound, dtype=jnp.float32)
    fc_b = jax.random.uniform(kfb, (out_channels,),
                              minval=-bound, maxval=bound, dtype=jnp.float32)

    ref = _reference(x, layer_w, layer_b, fc_w, fc_b)

    # 1) Exact-semantics path (f32 matmuls) -> tight tolerance vs f32 reference.
    out_f32 = mlp_forward(x, layer_w, layer_b, fc_w, fc_b, matmul_dtype=jnp.float32)
    out_f32 = jax.block_until_ready(out_f32)
    assert out_f32.shape == (batch, out_channels)
    assert jnp.allclose(out_f32, ref, atol=1e-4, rtol=1e-4), "f32 path mismatch vs reference"

    # 2) Performance path (bf16 matmul operands, f32 accumulation) -> relaxed tolerance.
    out_bf16 = mlp_forward(x, layer_w, layer_b, fc_w, fc_b, matmul_dtype=jnp.bfloat16)
    out_bf16 = jax.block_until_ready(out_bf16)
    assert out_bf16.shape == (batch, out_channels)
    assert jnp.allclose(out_bf16, ref, atol=2e-1, rtol=5e-2), "bf16 path mismatch vs reference"

    print("KERNEL_OK")
</pallas_src>

<mosaic_0001>
module attributes {stable_mosaic.version = 11 : i64} {
  func.func @_mlp_kernel(%arg0: i32, %arg1: memref<8x32xf32, #tpu.memory_space<vmem>>, %arg2: memref<1x32x32xf32, #tpu.memory_space<vmem>>, %arg3: memref<1x1x32xf32, #tpu.memory_space<vmem>>, %arg4: memref<16x32xf32, #tpu.memory_space<vmem>>, %arg5: memref<1x16xf32, #tpu.memory_space<vmem>>, %arg6: memref<8x16xf32, #tpu.memory_space<vmem>>, %arg7: memref<8x32xf32, #tpu.memory_space<vmem>>) attributes {dimension_semantics = [#tpu.dimension_semantics<arbitrary>], iteration_bounds = array<i64: 3>, scalar_prefetch = 0 : i64, scratch_operands = 1 : i64, tpu.core_type = #tpu.core_type<tc>, window_params = [{pipeline_mode = #tpu.pipeline_mode<synchronous>, transform_indices = @transform_0, window_bounds = array<i64: 8, 32>}, {transform_indices = @transform_1, window_bounds = array<i64: 1, 32, 32>}, {transform_indices = @transform_2, window_bounds = array<i64: 1, 1, 32>}, {pipeline_mode = #tpu.pipeline_mode<synchronous>, transform_indices = @transform_3, window_bounds = array<i64: 16, 32>}, {pipeline_mode = #tpu.pipeline_mode<synchronous>, transform_indices = @transform_4, window_bounds = array<i64: 1, 16>}, {pipeline_mode = #tpu.pipeline_mode<synchronous>, transform_indices = @transform_5, window_bounds = array<i64: 8, 16>}]} {
    %c0_i32 = arith.constant 0 : i32
    %0 = arith.cmpi eq, %arg0, %c0_i32 : i32
    %1 = arith.extui %0 : i1 to i32
    %c0_i32_0 = arith.constant 0 : i32
    %2 = arith.cmpi ne, %1, %c0_i32_0 : i32
    scf.if %2 {
      %c0_17 = arith.constant 0 : index
      %c0_18 = arith.constant 0 : index
      %34 = vector.load %arg1[%c0_17, %c0_18] : memref<8x32xf32, #tpu.memory_space<vmem>>, vector<8x32xf32>
      %c0_19 = arith.constant 0 : index
      %c0_20 = arith.constant 0 : index
      %35 = vector.load %arg7[%c0_19, %c0_20] : memref<8x32xf32, #tpu.memory_space<vmem>>, vector<8x32xf32>
      tpu.vector_store %arg7[%c0_19, %c0_20], %34 {strides = array<i32>} : memref<8x32xf32, #tpu.memory_space<vmem>>, vector<8x32xf32>,
    } else {
    }
    %c0 = arith.constant 0 : index
    %c0_1 = arith.constant 0 : index
    %3 = vector.load %arg7[%c0, %c0_1] : memref<8x32xf32, #tpu.memory_space<vmem>>, vector<8x32xf32>
    %c0_2 = arith.constant 0 : index
    %c0_3 = arith.constant 0 : index
    %c0_4 = arith.constant 0 : index
    %4 = vector.load %arg2[%c0_2, %c0_3, %c0_4] : memref<1x32x32xf32, #tpu.memory_space<vmem>>, vector<1x32x32xf32>
    %5 = vector.shape_cast %4 : vector<1x32x32xf32> to vector<32x32xf32>
    %cst = arith.constant dense<0.000000e+00> : vector<8x32xf32>
    %6 = tpu.matmul %3, %5, %cst {dimension_numbers = #tpu.dot_dimension_numbers<[1], [1], [0], [0], [0, 0, 1, 0], [], []>} : vector<8x32xf32>, vector<32x32xf32>, vector<8x32xf32> -> vector<8x32xf32>
    %c0_5 = arith.constant 0 : index
    %c0_6 = arith.constant 0 : index
    %c0_7 = arith.constant 0 : index
    %7 = vector.load %arg3[%c0_5, %c0_6, %c0_7] : memref<1x1x32xf32, #tpu.memory_space<vmem>>, vector<1x1x32xf32>
    %8 = vector.shape_cast %7 : vector<1x1x32xf32> to vector<1x32xf32>
    %9 = vector.broadcast %8 : vector<1x32xf32> to vector<8x32xf32>
    %10 = arith.addf %6, %9 : vector<8x32xf32>
    %cst_8 = arith.constant dense<0.000000e+00> : vector<32xf32>
    %11 = vector.multi_reduction <add>, %10, %cst_8 [0] : vector<8x32xf32> to vector<32xf32>
    %12 = vector.shape_cast %11 : vector<32xf32> to vector<1x32xf32>
    %cst_9 = arith.constant 8.000000e+00 : f32
    %13 = vector.broadcast %cst_9 : f32 to vector<1x32xf32>
    %14 = arith.divf %12, %13 : vector<1x32xf32>
    %15 = vector.broadcast %14 : vector<1x32xf32> to vector<8x32xf32>
    %16 = arith.subf %10, %15 : vector<8x32xf32>
    %17 = arith.mulf %16, %16 : vector<8x32xf32>
    %cst_10 = arith.constant dense<0.000000e+00> : vector<32xf32>
    %18 = vector.multi_reduction <add>, %17, %cst_10 [0] : vector<8x32xf32> to vector<32xf32>
    %19 = vector.shape_cast %18 : vector<32xf32> to vector<1x32xf32>
    %cst_11 = arith.constant 8.000000e+00 : f32
    %20 = vector.broadcast %cst_11 : f32 to vector<1x32xf32>
    %21 = arith.divf %19, %20 : vector<1x32xf32>
    %cst_12 = arith.constant 9.99999974E-6 : f32
    %22 = vector.broadcast %cst_12 : f32 to vector<1x32xf32>
    %23 = arith.addf %21, %22 : vector<1x32xf32>
    %24 = math.rsqrt %23 : vector<1x32xf32>
    %25 = vector.broadcast %24 : vector<1x32xf32> to vector<8x32xf32>
    %26 = arith.mulf %16, %25 : vector<8x32xf32>
    %cst_13 = arith.constant 0.000000e+00 : f32
    %27 = vector.broadcast %cst_13 : f32 to vector<8x32xf32>
    %28 = arith.maximumf %26, %27 : vector<8x32xf32>
    %29 = arith.addf %3, %28 : vector<8x32xf32>
    %c0_14 = arith.constant 0 : index
    %c0_15 = arith.constant 0 : index
    %30 = vector.load %arg7[%c0_14, %c0_15] : memref<8x32xf32, #tpu.memory_space<vmem>>, vector<8x32xf32>
    tpu.vector_store %arg7[%c0_14, %c0_15], %29 {strides = array<i32>} : memref<8x32xf32, #tpu.memory_space<vmem>>, vector<8x32xf32>,
    %c2_i32 = arith.constant 2 : i32
    %31 = arith.cmpi eq, %arg0, %c2_i32 : i32
    %32 = arith.extui %31 : i1 to i32
    %c0_i32_16 = arith.constant 0 : i32
    %33 = arith.cmpi ne, %32, %c0_i32_16 : i32
    scf.if %33 {
      %c0_17 = arith.constant 0 : index
      %c0_18 = arith.constant 0 : index
      %34 = vector.load %arg7[%c0_17, %c0_18] : memref<8x32xf32, #tpu.memory_space<vmem>>, vector<8x32xf32>
      %c0_19 = arith.constant 0 : index
      %c0_20 = arith.constant 0 : index
      %35 = vector.load %arg4[%c0_19, %c0_20] : memref<16x32xf32, #tpu.memory_space<vmem>>, vector<16x32xf32>
      %cst_21 = arith.constant dense<0.000000e+00> : vector<8x16xf32>
      %36 = tpu.matmul %34, %35, %cst_21 {dimension_numbers = #tpu.dot_dimension_numbers<[1], [1], [0], [0], [0, 0, 1, 0], [], []>} : vector<8x32xf32>, vector<16x32xf32>, vector<8x16xf32> -> vector<8x16xf32>
      %c0_22 = arith.constant 0 : index
      %c0_23 = arith.constant 0 : index
      %37 = vector.load %arg5[%c0_22, %c0_23] : memref<1x16xf32, #tpu.memory_space<vmem>>, vector<1x16xf32>
      %38 = vector.broadcast %37 : vector<1x16xf32> to vector<8x16xf32>
      %39 = arith.addf %36, %38 : vector<8x16xf32>
      %c0_24 = arith.constant 0 : index
      %c0_25 = arith.constant 0 : index
      %40 = vector.load %arg6[%c0_24, %c0_25] : memref<8x16xf32, #tpu.memory_space<vmem>>, vector<8x16xf32>
      tpu.vector_store %arg6[%c0_24, %c0_25], %39 {strides = array<i32>} : memref<8x16xf32, #tpu.memory_space<vmem>>, vector<8x16xf32>,
    } else {
    }
    return
  }
  func.func @transform_0(%arg0: i32) -> (i32, i32) {
    %c0_i32 = arith.constant 0 : i32
    %c0_i32_0 = arith.constant 0 : i32
    %c0_i32_1 = arith.constant 0 : i32
    return %c0_i32, %c0_i32_0 : i32, i32
  }
  func.func @transform_1(%arg0: i32) -> (i32, i32, i32) {
    %c0_i32 = arith.constant 0 : i32
    %c0_i32_0 = arith.constant 0 : i32
    %c0_i32_1 = arith.constant 0 : i32
    return %arg0, %c0_i32, %c0_i32_0 : i32, i32, i32
  }
  func.func @transform_2(%arg0: i32) -> (i32, i32, i32) {
    %c0_i32 = arith.constant 0 : i32
    %c0_i32_0 = arith.constant 0 : i32
    %c0_i32_1 = arith.constant 0 : i32
    return %arg0, %c0_i32, %c0_i32_0 : i32, i32, i32
  }
  func.func @transform_3(%arg0: i32) -> (i32, i32) {
    %c0_i32 = arith.constant 0 : i32
    %c0_i32_0 = arith.constant 0 : i32
    %c0_i32_1 = arith.constant 0 : i32
    return %c0_i32, %c0_i32_0 : i32, i32
  }
  func.func @transform_4(%arg0: i32) -> (i32, i32) {
    %c0_i32 = arith.constant 0 : i32
    %c0_i32_0 = arith.constant 0 : i32
    %c0_i32_1 = arith.constant 0 : i32
    return %c0_i32, %c0_i32_0 : i32, i32
  }
  func.func @transform_5(%arg0: i32) -> (i32, i32) {
    %c0_i32 = arith.constant 0 : i32
    %c0_i32_0 = arith.constant 0 : i32
    %c0_i32_1 = arith.constant 0 : i32
    return %c0_i32, %c0_i32_0 : i32, i32
  }
}

</mosaic_0001>

<bundles_post_ra>
// kernel: tpu_custom_call.1
= control target key start
LH: loop header
LB: loop body
LE: loop exit
PB: predicated region body
PF: predicated region fallthrough
CT: control target
= control target key end

     0   :  { %10 = vsyncpa [#allocation4], 0  ;;  %s1163_s0 = inlined_call_operand.hbm [shape: f32[8,32], index: 0, kind: input, shape index: {}]   ;;  %s1164_s1 = inlined_call_operand.hbm [shape: f32[3,32,32], index: 1, kind: input, shape index: {}]   ;;  %s1165_s2 = inlined_call_operand.vmem [shape: f32[3,1,32], index: 2, kind: input, shape index: {}]   ;;  %s1166_s3 = inlined_call_operand.hbm [shape: f32[16,32], index: 3, kind: input, shape index: {}]   ;;  %s1167_s4 = inlined_call_operand.vmem [shape: f32[1,16], index: 4, kind: input, shape index: {}]   ;;  %s1168_s5 = inlined_call_operand.hbm [shape: f32[8,16], index: 5, kind: output, shape index: {}]  }
   0x1   :  { %11 = vsyncpa [#allocation7], 0 }
   0x2   :  { %13 = vsyncpa [#allocation7 + $0x1], 0 }
   0x3   :  { %14 = vsyncpa [#allocation5], 0  ;;  %s930_s18 = smov 0   ;;  %s932_s19 = smov 0  }
   0x4   :  { %s934_s20 = smov 0   ;;  %s936_s21 = smov 0  }
   0x5 LB: > { %s949_s22 = sadd.s32 4294967295, %s886_s21   ;;  %s952_s23 = sadd.s32 1, %s886_s21   ;;  %s886_s21 = sphi %s936_s21, %s1191_s21   ;;  %s882_s20 = sphi %s934_s20, %s1190_s20   ;;  %s878_s19 = sphi %s932_s19, %s1189_s19   ;;  %s874_s18 = sphi %s930_s18, %s1188_s18  }
   0x6   : > { %s45_s24 = ssub.s32 %s886_s21, %s952_s23  ;;  %s48_s25 = sadd.s32 1, %s882_s20 }
   0x7   : > { %p46_p0 = scmp.eq.s32.totalorder %s45_s24, 0  ;;  %p55_p1 = scmp.ne.s32.totalorder %s882_s20, %s878_s19 }
   0x8   : > { %p56_p2 = scmp.eq.s32.totalorder %s886_s21, 0  ;;  %p61_p3 = scmp.ne.s32.totalorder %s878_s19, %s874_s18 }
   0x9   : > { %s962_s26 = scalar_select %p46_p0, %s882_s20, %s48_s25  }
   0xa   : > { %p964_p4 = por %p56_p2, %p55_p1  ;;  %p1169_p5 = scmp.eq.s32.totalorder %s949_s22, 0 }
   0xb   : > { %p585_p6 = scmp.ge.s32.totalorder %s886_s21, 1  ;;  %p161_p7 = scmp.lt.s32.totalorder %s886_s21, 4 }
   0xc   : > { %p973_p8 = por %p1169_p5, %p61_p3  ;;  %s888_s30 = smov [#allocation8]  }
   0xd   : > { %p978_p10 = pnand %p585_p6, %p161_p7  ;;  %s184_s6 = sshll.u32 %s888_s30, 4  ;;  %s185_s6 = int_to_ptr.vmem [resolvable:$true] %s184_s6 }
   0xe   : > { %s1174_s28 = scalar_select %p973_p8, 1, 0 }
   0xf   : > { %s1175_s29 = scalar_select %p978_p10, 1, 0 }
  0x10   : > { %p665_p11 = pneg %p978_p10  ;;  %p678_p13 = scmp.lt.s32.totalorder %s886_s21, 3 }
  0x11   : > { %s728_s11 = scalar_lea.hbm %s1166_s3, 256 }
  0x12   : > { %p986_p12 = pnand %p665_p11, %p1169_p5  ;;  %p993_p0 = pnand %p678_p13, %p964_p4 }
  0x13   : > { %p729_p1 = scmp.ne.s32.totalorder %s1166_s3, %s728_s11  ;;  %p735_p4 = scmp.lt.u32.totalorder %s728_s11, %s1166_s3 }
  0x14   : > { %s1177_s8 = scalar_select %p993_p0, 1, 0 }
  0x15   : > { %p730_p2 = pneg %p986_p12 }
  0x17   : > { %p731_p3 = pnand %p730_p2, %p729_p1 }
  0x19   : > { %p732_p6 = pneg %p731_p3 }
  0x1b   : > { %p737_p7 = pnand %p735_p4, %p732_p6 }
  0x1d   : > { %740 = shalt.err (!%p737_p7)
}
  0x1e   : > { %s741_s16 = scalar_lea.vmem %s185_s6, 256  ;;  %p749_p5 = scmp.lt.s32.totalorder %s185_s6, %s185_s6 }
  0x1f   : > { %p742_p11 = scmp.ne.s32.totalorder %s185_s6, %s741_s16  ;;  %p750_p8 = scmp.lt.s32.totalorder %s741_s16, %s741_s16 }
  0x21   : > { %p744_p13 = pnand %p742_p11, %p730_p2  ;;  %p751_p10 = por %p750_p8, %p749_p5 }
  0x23   : > { %p745_p9 = pneg %p744_p13 }
  0x25   : > { %p752_p0 = pnand %p751_p10, %p745_p9 }
  0x27   : > { %755 = shalt.err (!%p752_p0)
}
  0x28   : > { %s889_s17 = smov 128   ;;  %s890_s18 = smov 8  }
  0x29   : > { %671 = dma.hbm_to_vmem [thread:$0]  (!%p986_p12), %s1166_s3, 256, %s185_s6, [#allocation7], %s889_s17, %s889_s17, %s890_s18  }
  0x2a   : > { %s891_s27 = smov [#allocation3]   ;;  %s201_s9 = sand.u32 1, %s886_s21  }
  0x2b   : > { %s174_s30 = sshll.u32 %s891_s27, 4  ;;  %s756_s12 = scalar_lea.hbm %s1163_s0, 128  ;;  %s175_s30 = int_to_ptr.vmem [resolvable:$true] %s174_s30 }
  0x2c   : > { %p757_p5 = scmp.ne.s32.totalorder %s1163_s0, %s756_s12  ;;  %p763_p10 = scmp.lt.u32.totalorder %s756_s12, %s1163_s0 }
  0x2e   : > { %p759_p8 = pnand %p757_p5, %p730_p2 }
  0x30   : > { %p760_p9 = pneg %p759_p8 }
  0x32   : > { %p765_p0 = pnand %p763_p10, %p760_p9 }
  0x34   : > { %768 = shalt.err (!%p765_p0)
}
  0x35   : > { %s769_s6 = scalar_lea.vmem %s175_s30, 128  ;;  %p777_p4 = scmp.lt.s32.totalorder %s175_s30, %s175_s30 }
  0x36   : > { %p770_p1 = scmp.ne.s32.totalorder %s175_s30, %s769_s6  ;;  %p778_p7 = scmp.lt.s32.totalorder %s769_s6, %s769_s6 }
  0x38   : > { %p772_p3 = pnand %p770_p1, %p730_p2  ;;  %p779_p11 = por %p778_p7, %p777_p4 }
  0x3a   : > { %p773_p6 = pneg %p772_p3 }
  0x3c   : > { %p780_p13 = pnand %p779_p11, %p773_p6 }
  0x3e   : > { %783 = shalt.err (!%p780_p13)
}
  0x3f   : > { %668 = dma.hbm_to_vmem [thread:$0]  (!%p986_p12), %s1163_s0, 128, %s175_s30, [#allocation4]  }
  0x40   : > { %s203_s27 = sand.u32 1, %s882_s20   ;;  %s612_s10 = sshll.u32 %s886_s21, 9 }
  0x41   : > { %s589_s11 = sshll.u32 %s203_s27, 5  ;;  %s1048_s14 = scalar_lea.hbm %s1164_s1, %s612_s10 }
  0x42   : > { %s205_s7 = scalar_lea.vmem [#allocation6], %s589_s11  ;;  %s1052_s16 = scalar_lea.sflag [#allocation7], %s201_s9 }
  0x43   : > { %s212_s15 = sshll.u32 %s205_s7, 4  ;;  %s784_s6 = scalar_lea.hbm %s1048_s14, 512  ;;  %s1050_s15 = int_to_ptr.vmem [resolvable:$true] %s212_s15 }
  0x44   : > { %p785_p12 = scmp.ne.s32.totalorder %s1048_s14, %s784_s6  ;;  %p1178_p2 = scmp.ne.s32.totalorder %s1177_s8, 0 }
  0x45   : > { %s789_s24 = scalar_lea.hbm %s1164_s1, 1536  ;;  %p790_p10 = scmp.lt.u32.totalorder %s1048_s14, %s1164_s1 }
  0x46   : > { %p786_p5 = pneg %p1178_p2  ;;  %p791_p0 = scmp.lt.u32.totalorder %s789_s24, %s784_s6 }
  0x47   : > { %p793_p3 = scmp.lt.u32.totalorder %s784_s6, %s1048_s14 }
  0x48   : > { %p787_p8 = pnand %p786_p5, %p785_p12  ;;  %p792_p1 = por %p791_p0, %p790_p10 }
  0x4a   : > { %p788_p9 = pneg %p787_p8  ;;  %p794_p6 = por %p793_p3, %p792_p1 }
  0x4c   : > { %p795_p4 = pnand %p794_p6, %p788_p9 }
  0x4e   : > { %798 = shalt.err (!%p795_p4)
}
  0x4f   : > { %s799_s9 = scalar_lea.vmem %s1050_s15, 512  ;;  %s892_s10 = smov [#allocation6]  }
  0x50   : > { %p800_p7 = scmp.ne.s32.totalorder %s1050_s15, %s799_s9  ;;  %s804_s11 = sshll.u32 %s892_s10, 4  ;;  %s805_s11 = int_to_ptr.vmem [resolvable:$false] %s804_s11 }
  0x51   : > { %s806_s12 = scalar_lea.vmem %s805_s11, 1024  ;;  %p807_p12 = scmp.lt.s32.totalorder %s1050_s15, %s805_s11 }
  0x52   : > { %p802_p11 = pnand %p800_p7, %p786_p5  ;;  %p808_p8 = scmp.lt.s32.totalorder %s806_s12, %s799_s9 }
  0x54   : > { %p803_p13 = pneg %p802_p11  ;;  %p809_p10 = por %p808_p8, %p807_p12 }
  0x56   : > { %p810_p0 = pnand %p809_p10, %p803_p13 }
  0x58   : > { %813 = shalt.err (!%p810_p0)
}
  0x59   : > { %675 = dma.hbm_to_vmem [thread:$0]  (!%p1178_p2), %s1048_s14, 512, %s1050_s15, %s1052_s16, %s889_s17, %s889_s17, %s890_s18  }
  0x5a   : > { %p1179_p5 = scmp.ne.s32.totalorder %s1175_s29, 0 }
  0x5b   : > { %p1180_p9 = scmp.eq.s32.totalorder (!%p1179_p5), %s949_s22, 0 }
  0x5c   : > { %230 = sbr.rel (%p1179_p5) target bundleno = 651 (0x28b), region = 40 }
  0x63   : > { %857 = dma.done.wait (%p1180_p9), [#allocation4], 128   ;;  %p1181_p1 = pmov %p1180_p9 }
  0x64   : > { %s236_s8 = sand.u32 1, %s949_s22   ;;  %s238_s13 = sand.u32 1, %s878_s19  }
  0x65   : > { %859 = vsyncadd (%p1181_p1), [#allocation4], 4294967168  ;;  %s594_s7 = sshll.u32 %s238_s13, 5  ;;  %s237_s6 = scalar_lea.sflag [#allocation7], %s236_s8 }
  0x66   : > { %s240_s21 = scalar_lea.vmem [#allocation6], %s594_s7  ;;  %p1182_p3 = scmp.ne.s32.totalorder %s1174_s28, 0 }
  0x68   : > { %861 = dma.done.wait (%p1182_p3), %s237_s6, 512  }
  0x69   : > { %863 = vsyncadd (%p1182_p3), %s237_s6, 4294966784  ;;  %p1183_p2 = pmov %p1181_p1 }
  0x6a   : > { %p1184_p6 = pmov %p1181_p1 }
  0x6b   : > { %865 = dma.done.wait (%p1183_p2), [#allocation7], 256  }
  0x6c   : > { %867 = vsyncadd (%p1184_p6), [#allocation7], 4294967040  ;;  %p269_p4 = scmp.lt.s32.totalorder %s949_s22, 2  ;;  %p1185_p7 = scmp.ne.s32.totalorder %s949_s22, 0 }
  0x6d   : > { %v276_v0 = vld [vmem:[#allocation3] sm:$0xff] (!%p1185_p7)  ;;  %vm277_vm0 = vcmask (!%p1185_p7), 261120  }
  0x6e   : > { %s270_s29 = scalar_select %p269_p4, %s949_s22, 2 }
  0x6f   : > { %275 = sbr.rel (%p1185_p7) target bundleno = 118 (0x76), region = 56  ;;  %278 = vst.msk [vmem:[#allocation2] sm:$0xff] (!%p1185_p7), %vm277_vm0, %v276_v0 }
  0x70   : > { %s271_s14 = scalar_lea.vmem %s1165_s2, %s270_s29 }
  0x76 PF: > { %v280_v1 = vld [vmem:[%s240_s21] sm:$0xff]  ;;  %v281_v2 = vld [vmem:[%s240_s21 + $0x8] sm:$0xff]  ;;  %vm291_vm1 = vcmask 261120   ;;  %v893_v3 = vmov 0.0|0.0   ;;  %vm894_vm3 = vmmov 0   ;;  %v895_v6 = vmov 0.0  }
  0x77   : > { %639 = vmatprep.subr.bf16.mxu0 %v893_v3  ;;  %v640_v4 = vpack.c.bf16 %v281_v2, %v280_v1  ;;  %vm1108_vm2 = vmpackc.low %vm291_vm1, %vm291_vm1  ;;  %629 = vmatprep.mubr.msk.f32.mxu0 %vm894_vm3, %v895_v6  ;;  %v282_v7 = vld [vmem:[%s240_s21 + $0x10] sm:$0xff]  ;;  %v283_v8 = vld [vmem:[%s240_s21 + $0x18] sm:$0xff]  ;;  %p603_p11 = scmp.ne.s32.totalorder %s949_s22, 2 }
  0x78   : > { %v644_v9 = vpack.c.bf16 %v283_v8, %v282_v7  ;;  %v279_v10 = vld [vmem:[#allocation2] sm:$0xff]  ;;  %v407_v38 = vld [vmem:[#allocation8] sm:$0xff] (!%p603_p11)  ;;  %v408_v39 = vld [vmem:[#allocation8 + $0x8] sm:$0xff] (!%p603_p11)  ;;  %v896_v40 = vmov (!%p603_p11), 0.0|0.0   ;;  %vm897_vm4 = vmmov (!%p603_p11), 0   ;;  %v898_v42 = vmov (!%p603_p11), 0.0  }
  0x79   : > { %642 = vmatpush3.bf16.xpose.msk.msra.mxu0 %vm1108_vm2, %v640_v4  ;;  %v597_v11 = vld [vmem:[%s271_s14] ss:$0 sm:$0xff]  ;;  %v648_v41 = vpack.c.bf16 (!%p603_p11), %v408_v39, %v407_v38  ;;  %vm495_vm5 = vcmask (!%p603_p11), 130048  }
  0x7a   : > { %643 = vmatprep.subr.bf16.mxu0 %v893_v3  ;;  %v604_v44 = vld [vmem:[%s1167_s4] ss:$0 sm:$0xff] (!%p603_p11) }
  0x81   : > { %646 = vmatpush3.bf16.xpose.msk.msra.mxu0 %vm1108_vm2, %v644_v9 }
  0x82   : > { %647 = vmatprep.subr.bf16.mxu0 (!%p603_p11), %v896_v40 }
  0x88   : > { %630 = vmatmul.mubr.msk.f32.vlgmr.msra.gmra.mrb[0].mxu0 %vm291_vm1, %v279_v10 }
  0x89   : > { %636 = vmatprep.mubr.msk.f32.mxu0 (!%p603_p11), %vm897_vm4, %v898_v42  ;;  %650 = vmatpush3.bf16.xpose.msk.msra.mxu0 (!%p603_p11), %vm1108_vm2, %v648_v41 }
 0x15b   : > { %v373_v12 = vpop.f32.mrb[0].mxu0 }
 0x15c   : > { %v374_v13 = vadd.f32 %v597_v11, %v373_v12  ;;  %v631_v14 = vpop.f32.mrb[1].mxu0 }
 0x15e   : > { %v377_v15 = vsel %vm291_vm1, %v374_v13, 0.0 }
 0x15f   : > { %v378_v16 = vrot.slane %v377_v15, 4 }
 0x161   : > { %v379_v17 = vadd.f32 %v378_v16, %v377_v15 }
 0x163   : > { %v380_v18 = vrot.slane %v379_v17, 2 }
 0x165   : > { %v381_v19 = vadd.f32 %v380_v18, %v379_v17 }
 0x167   : > { %v382_v20 = vrot.slane %v381_v19, 1 }
 0x169   : > { %v383_v21 = vadd.f32 %v382_v20, %v381_v19 }
 0x16b   : > { %v385_v22 = vmul.f32 0.125, %v383_v21 }
 0x16d   : > { %v386_v23 = vsub.f32 %v374_v13, %v385_v22 }
 0x16f   : > { %v387_v24 = vmul.f32 %v386_v23, %v386_v23 }
 0x171   : > { %v388_v25 = vsel %vm291_vm1, %v387_v24, 0.0 }
 0x172   : > { %v389_v26 = vrot.slane %v388_v25, 4 }
 0x174   : > { %v390_v27 = vadd.f32 %v389_v26, %v388_v25 }
 0x176   : > { %v391_v28 = vrot.slane %v390_v27, 2 }
 0x178   : > { %v392_v29 = vadd.f32 %v391_v28, %v390_v27 }
 0x17a   : > { %v393_v30 = vrot.slane %v392_v29, 1 }
 0x17c   : > { %v394_v31 = vadd.f32 %v393_v30, %v392_v29 }
 0x17e   : > { %v395_v32 = vmul.f32 0.125, %v394_v31 }
 0x180   : > { %v396_v33 = vadd.f32 1e-05, %v395_v32 }
 0x182   : > { %726 = vrsqrt.f32 %v396_v33 }
 0x18c   : > { %v727_v34 = vpop.eup %726 }
 0x18d   : > { %v398_v35 = vmul.f32 %v727_v34, %v386_v23  ;;  %405 = sbr.rel (%p603_p11) target bundleno = 626 (0x272), region = 60 }
 0x18f   : > { %v399_v36 = vmax.f32 %v398_v35, 0.0 }
 0x191   : > { %v400_v37 = vadd.f32 %v399_v36, %v279_v10 }
 0x193   : > { %401 = vst.msk [vmem:[#allocation2] sm:$0xff] %vm291_vm1, %v400_v37 }
 0x19a   : > { %v406_v43 = vld [vmem:[#allocation2] sm:$0xff] }
 0x19b   : > { %637 = vmatmul.mubr.msk.f32.vlgmr.msra.gmra.mrb[0].mxu0 %vm291_vm1, %v406_v43 }
 0x26e   : > { %v491_v45 = vpop.f32.mrb[0].mxu0 }
 0x26f   : > { %v492_v46 = vadd.f32 %v604_v44, %v491_v45  ;;  %v638_v47 = vpop.f32.mrb[1].mxu0 }
 0x271   : > { %496 = vst.msk [vmem:[#allocation9] sm:$0xff] %vm495_vm5, %v492_v46 }
 0x272 PF: > { %p681_p13 = scmp.eq.s32.totalorder %s949_s22, 2  ;;  %s899_s16 = smov [#allocation9]  }
 0x273   : > { %s504_s30 = sshll.u32 %s899_s16, 4  ;;  %s505_s30 = int_to_ptr.vmem [resolvable:$true] %s504_s30 }
 0x274   : > { %s814_s24 = scalar_lea.vmem %s505_s30, 128  ;;  %p821_p0 = scmp.lt.s32.totalorder %s505_s30, %s505_s30 }
 0x275   : > { %p815_p12 = scmp.ne.s32.totalorder %s505_s30, %s814_s24  ;;  %p822_p5 = scmp.lt.s32.totalorder %s814_s24, %s814_s24 }
 0x277   : > { %p816_p8 = pnand %p815_p12, %p681_p13  ;;  %p823_p9 = por %p822_p5, %p821_p0 }
 0x279   : > { %p817_p10 = pneg %p816_p8 }
 0x27b   : > { %p824_p1 = pnand %p823_p9, %p817_p10 }
 0x27d   : > { %827 = shalt.err (!%p824_p1)
}
 0x27e   : > { %s828_s9 = scalar_lea.hbm %s1168_s5, 128 }
 0x27f   : > { %p829_p3 = scmp.ne.s32.totalorder %s1168_s5, %s828_s9  ;;  %p834_p4 = scmp.lt.u32.totalorder %s828_s9, %s1168_s5 }
 0x281   : > { %p830_p2 = pnand %p829_p3, %p681_p13 }
 0x283   : > { %p831_p6 = pneg %p830_p2 }
 0x285   : > { %p836_p7 = pnand %p834_p4, %p831_p6 }
 0x287   : > { %839 = shalt.err (!%p836_p7)
}
 0x288   : > { %662 = dma.vmem_to_hbm [thread:$0]  (%p681_p13), %s505_s30, 128, %s1168_s5, [#allocation5]  }
 0x289   : > { %869 = dma.done.wait (%p681_p13), [#allocation5], 128  }
 0x28a   : > { %871 = vsyncadd (%p681_p13), [#allocation5], 4294967168 }
 0x28b PF: > { %p17_p11 = scmp.ge.s32.totalorder %s952_s23, 5   ;;  %s1188_s18 = smov %s878_s19 }
 0x28c   : > { %s1189_s19 = smov %s882_s20  ;;  %s1190_s20 = smov %s962_s26 }
 0x28d   : > { %s1191_s21 = smov %s952_s23  ;;  %19 = sbr.rel (!%p17_p11) target bundleno = 5 (0x5), region = 97 }
 0x294   :  { %517 = vsyncpa [#allocation4], 1 }
 0x295   :  { %519 = vsyncpa [#allocation4 + $0x1], 1 }
 0x296   :  { %520 = vsyncpa [#allocation7], 1 }
 0x297   :  { %522 = vsyncpa [#allocation7 + $0x1], 1 }
 0x298   :  { %523 = vsyncpa [#allocation5], 1 }
 0x299   :  { %525 = vsyncpa [#allocation5 + $0x1], 1 }

</bundles_post_ra>
